<compile_context>
chip_gen: v7x
topology: tpu7x:2x2x1
jax: 0.10.0
libtpu: 0.0.40
codegen_flags: <defaults>
</compile_context>

<pallas_src>
import math
import functools

import jax
import jax.numpy as jnp
from jax.experimental import pallas as pl
from jax.experimental.pallas import tpu as pltpu

_BF16_BYTES = 2
_F32_BYTES = 4


# ---------------------------------------------------------------------------
# Fused kernel: merge layer + (optional) extra layers, all in VMEM.
# ---------------------------------------------------------------------------
def _make_fused_kernel(num_extra):
    if num_extra == 0:
        def kernel(a_ref, e_ref, wa_ref, we_ref, b1_ref, o_ref):
            # concat([a, e], -1) @ W1 == a @ W1[:dim] + e @ W1[dim:]  (avoids lane-axis concat)
            acc = jnp.dot(a_ref[...], wa_ref[...], preferred_element_type=jnp.float32)
            acc += jnp.dot(e_ref[...], we_ref[...], preferred_element_type=jnp.float32)
            acc += b1_ref[...]                       # (1, dim) f32, broadcast over rows
            o_ref[...] = jnp.maximum(acc, 0.0).astype(o_ref.dtype)
        return kernel

    def kernel(a_ref, e_ref, wa_ref, we_ref, b1_ref, wx_ref, bx_ref, o_ref):
        acc = jnp.dot(a_ref[...], wa_ref[...], preferred_element_type=jnp.float32)
        acc += jnp.dot(e_ref[...], we_ref[...], preferred_element_type=jnp.float32)
        acc += b1_ref[...]
        h = jnp.maximum(acc, 0.0)                    # f32 epilogue (v5e has no bf16 VALU)
        for l in range(num_extra):                   # static unroll over layers
            acc = jnp.dot(h.astype(wx_ref.dtype), wx_ref[l],
                          preferred_element_type=jnp.float32)
            acc += bx_ref[l]                         # (1, dim) f32
            h = jnp.maximum(acc, 0.0)
        o_ref[...] = h.astype(o_ref.dtype)
    return kernel


# ---------------------------------------------------------------------------
# VMEM budget / tiling helpers
# ---------------------------------------------------------------------------
def _round_up(x, m):
    return (x + m - 1) // m * m


@functools.lru_cache(maxsize=None)
def _vmem_budget_bytes():
    """Generation-aware usable-VMEM budget (physical capacity minus headroom)."""
    try:
        cap = int(pltpu.get_tpu_info().vmem_capacity_bytes)   # 128 MiB v5e/v6e, 64 MiB v7x
    except Exception:
        cap = 64 * 1024 * 1024                                # conservative (v7x-sized) fallback
    # Leave headroom for Mosaic internal scratch / compiler temporaries.
    return min(int(cap * 3 // 4), cap - (8 << 20))            # 96 MiB on 128, 48 MiB on 64


def _fused_vmem_bytes(tile_m, dim, num_extra):
    # Resident weights/biases (double-buffered by the default BlockSpec pipeline).
    w_bytes = 2 * ((2 + num_extra) * dim * dim * _BF16_BYTES
                   + (1 + num_extra) * dim * _F32_BYTES)
    # Streamed a/e (bf16) and out (f32), double-buffered.
    stream = 2 * tile_m * dim * (2 * _BF16_BYTES) + 2 * tile_m * dim * _F32_BYTES
    # In-kernel f32 temporaries (acc + h).
    temps = 2 * tile_m * dim * _F32_BYTES
    scratch = 2 << 20                                # Mosaic internal scratch allowance
    return w_bytes + stream + temps + scratch


def _choose_tile_m(M, dim, num_extra):
    budget = _vmem_budget_bytes()
    tile = 2048                                      # big tiles: ~85%+ of HBM roofline
    while tile > 16 and _fused_vmem_bytes(tile, dim, num_extra) > budget:
        tile //= 2
    # Never tile larger than the (16-rounded) number of rows; multiple of 16 for bf16 packing.
    return max(16, min(tile, _round_up(M, 16)))


# ---------------------------------------------------------------------------
# Fused forward over flattened rows:  a2d, e2d: (M, dim) -> (M, dim) f32
# ---------------------------------------------------------------------------
def merger_forward_2d(a2d, e2d, wa, we, b1, wx, bx):
    M, dim = a2d.shape
    out_dtype = a2d.dtype
    num_extra = 0 if wx is None else wx.shape[0]

    # bf16 MXU operands: halves streamed activation bytes; f32 accumulation in-kernel.
    a2d = a2d.astype(jnp.bfloat16)
    e2d = e2d.astype(jnp.bfloat16)

    tile_m = _choose_tile_m(M, dim, num_extra)
    grid = (pl.cdiv(M, tile_m),)                     # partial last block masked by Pallas

    act_spec = pl.BlockSpec((tile_m, dim), lambda i: (i, 0))
    in_specs = [
        act_spec,                                            # a tile (streams, bf16)
        act_spec,                                            # e tile (streams, bf16)
        pl.BlockSpec((dim, dim), lambda i: (0, 0)),          # W1[:dim]  (resident, bf16)
        pl.BlockSpec((dim, dim), lambda i: (0, 0)),          # W1[dim:]  (resident, bf16)
        pl.BlockSpec((1, dim), lambda i: (0, 0)),            # b1        (resident, f32)
    ]
    args = [a2d, e2d, wa, we, b1]
    if num_extra > 0:
        in_specs += [
            pl.BlockSpec((num_extra, dim, dim), lambda i: (0, 0, 0)),  # stacked Ws (bf16)
            pl.BlockSpec((num_extra, 1, dim), lambda i: (0, 0, 0)),    # stacked bs (f32)
        ]
        args += [wx, bx]

    budget = _vmem_budget_bytes()
    needed = _fused_vmem_bytes(tile_m, dim, num_extra)
    vmem_limit = int(min(max(needed + (2 << 20), 16 << 20), budget))

    return pl.pallas_call(
        _make_fused_kernel(num_extra),
        out_shape=jax.ShapeDtypeStruct((M, dim), out_dtype),
        grid=grid,
        in_specs=in_specs,
        out_specs=act_spec,
        compiler_params=pltpu.CompilerParams(
            dimension_semantics=("parallel",),
            vmem_limit_bytes=vmem_limit,
        ),
    )(*args)


# ---------------------------------------------------------------------------
# Merger module (parameters built deterministically, PyTorch-style init)
# ---------------------------------------------------------------------------
class Merger:
    """Pallas-TPU Merger. Dropout is identity (inference semantics)."""

    def __init__(self, dim, drop_p, num_layers=1, key=None):
        self.dim = dim
        self.drop_p = drop_p          # kept for API parity; identity at inference
        self.num_layers = num_layers
        key = jax.random.PRNGKey(42) if key is None else key

        def linear_init(k, fan_in, fan_out):
            kw, kb = jax.random.split(k)
            bound = 1.0 / math.sqrt(fan_in)
            w = jax.random.uniform(kw, (fan_in, fan_out), jnp.float32, -bound, bound)
            b = jax.random.uniform(kb, (fan_out,), jnp.float32, -bound, bound)
            return w, b

        keys = jax.random.split(key, num_layers)
        w1, b1 = linear_init(keys[0], 2 * dim, dim)

        # f32 masters (kept for the plain-JAX reference); kernel operands pre-split /
        # pre-stacked / pre-cast ONCE at init so there is no per-call slicing or casting.
        self.w1_f32 = w1
        self.b1_f32 = b1
        self.wa = w1[:dim, :].astype(jnp.bfloat16)          # (dim, dim) bf16
        self.we = w1[dim:, :].astype(jnp.bfloat16)          # (dim, dim) bf16
        self.b1 = b1.reshape(1, dim)                        # (1, dim)  f32

        self.extra_f32 = [linear_init(keys[i], dim, dim) for i in range(1, num_layers)]
        if self.extra_f32:
            self.wx = jnp.stack([w for w, _ in self.extra_f32]).astype(jnp.bfloat16)   # (L-1,dim,dim)
            self.bx = jnp.stack([b.reshape(1, dim) for _, b in self.extra_f32])        # (L-1,1,dim) f32
        else:
            self.wx = None
            self.bx = None

        self._fwd = jax.jit(merger_forward_2d)

    def __call__(self, embedded_frames, emo_frames):
        lead = embedded_frames.shape[:-1]
        a2d = embedded_frames.reshape(-1, self.dim)
        e2d = emo_frames.reshape(-1, self.dim)
        out = self._fwd(a2d, e2d, self.wa, self.we, self.b1, self.wx, self.bx)
        return out.reshape(*lead, self.dim)


# ---------------------------------------------------------------------------
# References (plain JAX) for correctness checks
# ---------------------------------------------------------------------------
def merger_ref_bf16(m: Merger, a, e):
    """Mirrors the kernel arithmetic exactly: bf16 operands, f32 accumulation/epilogue."""
    ab = a.astype(jnp.bfloat16)
    eb = e.astype(jnp.bfloat16)
    h = (jnp.dot(ab, m.wa, preferred_element_type=jnp.float32)
         + jnp.dot(eb, m.we, preferred_element_type=jnp.float32)
         + m.b1[0])
    h = jnp.maximum(h, 0.0)
    if m.wx is not None:
        for l in range(m.wx.shape[0]):
            h = jnp.maximum(
                jnp.dot(h.astype(jnp.bfloat16), m.wx[l],
                        preferred_element_type=jnp.float32) + m.bx[l, 0], 0.0)
    return h


def merger_ref_f32(m: Merger, a, e):
    """Full-precision reference of the original module semantics."""
    x = jnp.concatenate([a, e], axis=-1)
    h = jnp.maximum(x @ m.w1_f32 + m.b1_f32, 0.0)
    for (w, b) in m.extra_f32:
        h = jnp.maximum(h @ w + b, 0.0)
    return h


if __name__ == "__main__":
    B, S, dim = 2, 8, 32
    key = jax.random.PRNGKey(0)
    k1, k2 = jax.random.split(key)
    embedded_frames = jax.random.normal(k1, (B, S, dim), jnp.float32)
    emo_frames = jax.random.normal(k2, (B, S, dim), jnp.float32)

    # num_layers=2 exercises the fused extra-layer path.
    merger = Merger(dim=dim, drop_p=0.1, num_layers=2)
    out = jax.block_until_ready(merger(embedded_frames, emo_frames))
    assert out.shape == (B, S, dim), out.shape
    ref_bf16 = merger_ref_bf16(merger, embedded_frames, emo_frames)
    assert jnp.allclose(out, ref_bf16, atol=2e-3, rtol=2e-3), \
        float(jnp.max(jnp.abs(out - ref_bf16)))
    ref_f32 = merger_ref_f32(merger, embedded_frames, emo_frames)
    assert jnp.allclose(out, ref_f32, atol=1e-1, rtol=1e-1), \
        float(jnp.max(jnp.abs(out - ref_f32)))

    # num_layers=1 exercises the merge-only path.
    merger1 = Merger(dim=dim, drop_p=0.1, num_layers=1)
    out1 = jax.block_until_ready(merger1(embedded_frames, emo_frames))
    ref1_bf16 = merger_ref_bf16(merger1, embedded_frames, emo_frames)
    assert jnp.allclose(out1, ref1_bf16, atol=2e-3, rtol=2e-3), \
        float(jnp.max(jnp.abs(out1 - ref1_bf16)))

    print("KERNEL_OK")
</pallas_src>

<mosaic_0001>
module attributes {stable_mosaic.version = 11 : i64} {
  func.func @kernel(%arg0: i32, %arg1: memref<16x32xbf16, #tpu.memory_space<vmem>>, %arg2: memref<16x32xbf16, #tpu.memory_space<vmem>>, %arg3: memref<32x32xbf16, #tpu.memory_space<vmem>>, %arg4: memref<32x32xbf16, #tpu.memory_space<vmem>>, %arg5: memref<1x32xf32, #tpu.memory_space<vmem>>, %arg6: memref<1x32x32xbf16, #tpu.memory_space<vmem>>, %arg7: memref<1x1x32xf32, #tpu.memory_space<vmem>>, %arg8: memref<16x32xf32, #tpu.memory_space<vmem>>) attributes {dimension_semantics = [#tpu.dimension_semantics<parallel>], iteration_bounds = array<i64: 1>, scalar_prefetch = 0 : i64, scratch_operands = 0 : i64, tpu.core_type = #tpu.core_type<tc>, window_params = [{transform_indices = @transform_0, window_bounds = array<i64: 16, 32>}, {transform_indices = @transform_1, window_bounds = array<i64: 16, 32>}, {pipeline_mode = #tpu.pipeline_mode<synchronous>, transform_indices = @transform_2, window_bounds = array<i64: 32, 32>}, {pipeline_mode = #tpu.pipeline_mode<synchronous>, transform_indices = @transform_3, window_bounds = array<i64: 32, 32>}, {pipeline_mode = #tpu.pipeline_mode<synchronous>, transform_indices = @transform_4, window_bounds = array<i64: 1, 32>}, {pipeline_mode = #tpu.pipeline_mode<synchronous>, transform_indices = @transform_5, window_bounds = array<i64: 1, 32, 32>}, {pipeline_mode = #tpu.pipeline_mode<synchronous>, transform_indices = @transform_6, window_bounds = array<i64: 1, 1, 32>}, {transform_indices = @transform_7, window_bounds = array<i64: 16, 32>}]} {
    %c0 = arith.constant 0 : index
    %c0_0 = arith.constant 0 : index
    %0 = vector.load %arg1[%c0, %c0_0] : memref<16x32xbf16, #tpu.memory_space<vmem>>, vector<16x32xbf16>
    %c0_1 = arith.constant 0 : index
    %c0_2 = arith.constant 0 : index
    %1 = vector.load %arg3[%c0_1, %c0_2] : memref<32x32xbf16, #tpu.memory_space<vmem>>, vector<32x32xbf16>
    %cst = arith.constant dense<0.000000e+00> : vector<16x32xf32>
    %2 = tpu.matmul %0, %1, %cst {dimension_numbers = #tpu.dot_dimension_numbers<[1], [0], [0], [1], [0, 0, 1, 1], [], []>} : vector<16x32xbf16>, vector<32x32xbf16>, vector<16x32xf32> -> vector<16x32xf32>
    %c0_3 = arith.constant 0 : index
    %c0_4 = arith.constant 0 : index
    %3 = vector.load %arg2[%c0_3, %c0_4] : memref<16x32xbf16, #tpu.memory_space<vmem>>, vector<16x32xbf16>
    %c0_5 = arith.constant 0 : index
    %c0_6 = arith.constant 0 : index
    %4 = vector.load %arg4[%c0_5, %c0_6] : memref<32x32xbf16, #tpu.memory_space<vmem>>, vector<32x32xbf16>
    %cst_7 = arith.constant dense<0.000000e+00> : vector<16x32xf32>
    %5 = tpu.matmul %3, %4, %cst_7 {dimension_numbers = #tpu.dot_dimension_numbers<[1], [0], [0], [1], [0, 0, 1, 1], [], []>} : vector<16x32xbf16>, vector<32x32xbf16>, vector<16x32xf32> -> vector<16x32xf32>
    %6 = arith.addf %2, %5 : vector<16x32xf32>
    %c0_8 = arith.constant 0 : index
    %c0_9 = arith.constant 0 : index
    %7 = vector.load %arg5[%c0_8, %c0_9] : memref<1x32xf32, #tpu.memory_space<vmem>>, vector<1x32xf32>
    %8 = vector.broadcast %7 : vector<1x32xf32> to vector<16x32xf32>
    %9 = arith.addf %6, %8 : vector<16x32xf32>
    %cst_10 = arith.constant 0.000000e+00 : f32
    %10 = vector.broadcast %cst_10 : f32 to vector<16x32xf32>
    %11 = arith.maximumf %9, %10 : vector<16x32xf32>
    %12 = arith.truncf %11 : vector<16x32xf32> to vector<16x32xbf16>
    %c0_11 = arith.constant 0 : index
    %c0_12 = arith.constant 0 : index
    %c0_13 = arith.constant 0 : index
    %13 = vector.load %arg6[%c0_11, %c0_12, %c0_13] : memref<1x32x32xbf16, #tpu.memory_space<vmem>>, vector<1x32x32xbf16>
    %14 = vector.shape_cast %13 : vector<1x32x32xbf16> to vector<32x32xbf16>
    %cst_14 = arith.constant dense<0.000000e+00> : vector<16x32xf32>
    %15 = tpu.matmul %12, %14, %cst_14 {dimension_numbers = #tpu.dot_dimension_numbers<[1], [0], [0], [1], [0, 0, 1, 1], [], []>} : vector<16x32xbf16>, vector<32x32xbf16>, vector<16x32xf32> -> vector<16x32xf32>
    %c0_15 = arith.constant 0 : index
    %c0_16 = arith.constant 0 : index
    %c0_17 = arith.constant 0 : index
    %16 = vector.load %arg7[%c0_15, %c0_16, %c0_17] : memref<1x1x32xf32, #tpu.memory_space<vmem>>, vector<1x1x32xf32>
    %17 = vector.shape_cast %16 : vector<1x1x32xf32> to vector<1x32xf32>
    %18 = vector.broadcast %17 : vector<1x32xf32> to vector<16x32xf32>
    %19 = arith.addf %15, %18 : vector<16x32xf32>
    %cst_18 = arith.constant 0.000000e+00 : f32
    %20 = vector.broadcast %cst_18 : f32 to vector<16x32xf32>
    %21 = arith.maximumf %19, %20 : vector<16x32xf32>
    %c0_19 = arith.constant 0 : index
    %c0_20 = arith.constant 0 : index
    %22 = vector.load %arg8[%c0_19, %c0_20] : memref<16x32xf32, #tpu.memory_space<vmem>>, vector<16x32xf32>
    tpu.vector_store %arg8[%c0_19, %c0_20], %21 {strides = array<i32>} : memref<16x32xf32, #tpu.memory_space<vmem>>, vector<16x32xf32>,
    return
  }
  func.func @transform_0(%arg0: i32) -> (i32, i32) {
    %c0_i32 = arith.constant 0 : i32
    %c0_i32_0 = arith.constant 0 : i32
    return %arg0, %c0_i32 : i32, i32
  }
  func.func @transform_1(%arg0: i32) -> (i32, i32) {
    %c0_i32 = arith.constant 0 : i32
    %c0_i32_0 = arith.constant 0 : i32
    return %arg0, %c0_i32 : i32, i32
  }
  func.func @transform_2(%arg0: i32) -> (i32, i32) {
    %c0_i32 = arith.constant 0 : i32
    %c0_i32_0 = arith.constant 0 : i32
    %c0_i32_1 = arith.constant 0 : i32
    return %c0_i32, %c0_i32_0 : i32, i32
  }
  func.func @transform_3(%arg0: i32) -> (i32, i32) {
    %c0_i32 = arith.constant 0 : i32
    %c0_i32_0 = arith.constant 0 : i32
    %c0_i32_1 = arith.constant 0 : i32
    return %c0_i32, %c0_i32_0 : i32, i32
  }
  func.func @transform_4(%arg0: i32) -> (i32, i32) {
    %c0_i32 = arith.constant 0 : i32
    %c0_i32_0 = arith.constant 0 : i32
    %c0_i32_1 = arith.constant 0 : i32
    return %c0_i32, %c0_i32_0 : i32, i32
  }
  func.func @transform_5(%arg0: i32) -> (i32, i32, i32) {
    %c0_i32 = arith.constant 0 : i32
    %c0_i32_0 = arith.constant 0 : i32
    %c0_i32_1 = arith.constant 0 : i32
    %c0_i32_2 = arith.constant 0 : i32
    return %c0_i32, %c0_i32_0, %c0_i32_1 : i32, i32, i32
  }
  func.func @transform_6(%arg0: i32) -> (i32, i32, i32) {
    %c0_i32 = arith.constant 0 : i32
    %c0_i32_0 = arith.constant 0 : i32
    %c0_i32_1 = arith.constant 0 : i32
    %c0_i32_2 = arith.constant 0 : i32
    return %c0_i32, %c0_i32_0, %c0_i32_1 : i32, i32, i32
  }
  func.func @transform_7(%arg0: i32) -> (i32, i32) {
    %c0_i32 = arith.constant 0 : i32
    %c0_i32_0 = arith.constant 0 : i32
    return %arg0, %c0_i32 : i32, i32
  }
}

</mosaic_0001>

<bundles_post_ra>
// kernel: merger_forward_2d.1
= control target key start
LH: loop header
LB: loop body
LE: loop exit
PB: predicated region body
PF: predicated region fallthrough
CT: control target
= control target key end

     0   :  { %v345_v1 = vmov 0.0   ;;  %vm346_vm0 = vmmov 0   ;;  %vm57_vm1 = vcmask 261120   ;;  %s440_s0 = inlined_call_operand.vmem [shape: bf16[16,32], index: 0, kind: input, shape index: {}]   ;;  %s441_s1 = inlined_call_operand.vmem [shape: bf16[16,32], index: 1, kind: input, shape index: {}]   ;;  %s442_s2 = inlined_call_operand.vmem [shape: bf16[32,32], index: 2, kind: input, shape index: {}]   ;;  %s443_s3 = inlined_call_operand.vmem [shape: bf16[32,32], index: 3, kind: input, shape index: {}]   ;;  %s444_s4 = inlined_call_operand.vmem [shape: f32[1,32], index: 4, kind: input, shape index: {}]   ;;  %s445_s5 = inlined_call_operand.vmem [shape: bf16[1,32,32], index: 5, kind: input, shape index: {}]   ;;  %s446_s6 = inlined_call_operand.vmem [shape: f32[1,1,32], index: 6, kind: input, shape index: {}]   ;;  %s447_s7 = inlined_call_operand.hbm [shape: f32[16,32], index: 7, kind: output, shape index: {}]  }
   0x1   :  { %v313_v0 = vld [vmem:[%s443_s3] sm:$0xff]   ;;  %284 = vmatprep.subr.bf16.mxu0 %v345_v1  ;;  %292 = vmatprep.subr.bf16.mxu1 %v345_v1  ;;  %v315_v3 = vld [vmem:[%s443_s3 + $0x8] sm:$0xff]  }
   0x2   :  { %v314_v2 = vld [vmem:[%s442_s2] sm:$0xff]   ;;  %285 = vmatpush3.bf16.msra.mxu0 %v313_v0  ;;  %288 = vmatprep.mubr.msk.bf16.mxu0 %vm346_vm0, %v345_v1  ;;  %v316_v4 = vld [vmem:[%s442_s2 + $0x8] sm:$0xff]  }
   0x3   :  { %293 = vmatpush3.bf16.msra.mxu1 %v314_v2  ;;  %286 = vmatprep.subr.bf16.mxu0 %v345_v1  ;;  %v317_v5 = vld [vmem:[%s441_s1] sm:$0xff]  }
   0x4   :  { %294 = vmatprep.subr.bf16.mxu1 %v345_v1  ;;  %296 = vmatprep.mubr.msk.bf16.mxu1 %vm346_vm0, %v345_v1  ;;  %v318_v6 = vld [vmem:[%s440_s0] sm:$0xff]  }
   0x6   :  { %287 = vmatpush3.bf16.msra.mxu0 %v315_v3 }
   0x7   :  { %295 = vmatpush3.bf16.msra.mxu1 %v316_v4  ;;  %300 = vmatprep.subr.bf16.mxu0 %v345_v1 }
   0x8   :  { %12 = vsyncpa [#allocation3], 0  ;;  %v319_v7 = vld [vmem:[%s445_s5] sm:$0xff]   ;;  %v320_v8 = vld [vmem:[%s445_s5 + $0x8] sm:$0xff]  }
   0x9   :  { %289 = vmatmul.mubr.msk.bf16.vlgmr.msra.gmra.mrb[0].mxu0 %vm57_vm1, %v317_v5  ;;  %v270_v11 = vld [vmem:[%s444_s4] ss:$0 sm:$0xff]  ;;  %s347_s4 = smov [#allocation2]  }
   0xa   :  { %297 = vmatmul.mubr.msk.bf16.vlgmr.msra.gmra.mrb[0].mxu1 %vm57_vm1, %v318_v6  ;;  %304 = vmatprep.mubr.msk.bf16.mxu0 %vm346_vm0, %v345_v1  ;;  %v271_v25 = vld [vmem:[%s446_s6] ss:$0 sm:$0xff]  ;;  %s251_s16 = sshll.u32 %s347_s4, 4  ;;  %s252_s16 = int_to_ptr.vmem [resolvable:$true] %s251_s16 }
   0xb   :  { %301 = vmatpush3.bf16.msra.mxu0 %v319_v7  ;;  %s321_s17 = scalar_lea.vmem %s252_s16, 256  ;;  %p326_p1 = scmp.lt.s32.totalorder %s252_s16, %s252_s16 }
   0xc   :  { %302 = vmatprep.subr.bf16.mxu0 %v345_v1  ;;  %p322_p0 = scmp.ne.s32.totalorder %s252_s16, %s321_s17  ;;  %p327_p2 = scmp.lt.s32.totalorder %s321_s17, %s321_s17 }
   0xe   :  { %p328_p3 = por %p327_p2, %p326_p1 }
   0xf   :  { %303 = vmatpush3.bf16.msra.mxu0 %v320_v8 }
  0x10   :  { %p329_p4 = pnand %p328_p3, %p322_p0 }
  0xdc   :  { %v95_v9 = vpop.f32.mrb[0].mxu0 }
  0xdd   :  { %v156_v10 = vpop.f32.mrb[0].mxu1  ;;  %v290_v12 = vpop.f32.mrb[1].mxu0 }
  0xde   :  { %v157_v13 = vadd.f32 %v156_v10, %v95_v9  ;;  %v298_v14 = vpop.f32.mrb[1].mxu1  ;;  %v98_v15 = vpop.f32.mrb[2].mxu0 }
  0xdf   :  { %v159_v16 = vpop.f32.mrb[2].mxu1  ;;  %v291_v17 = vpop.f32.mrb[3].mxu0 }
  0xe0   :  { %v170_v18 = vadd.f32 %v270_v11, %v157_v13  ;;  %v160_v19 = vadd.f32 %v159_v16, %v98_v15  ;;  %v299_v20 = vpop.f32.mrb[3].mxu1 }
  0xe2   :  { %v171_v21 = vadd.f32 %v270_v11, %v160_v19  ;;  %v172_v22 = vmax.f32 %v170_v18, 0.0 }
  0xe4   :  { %v173_v23 = vmax.f32 %v171_v21, 0.0 }
  0xe6   :  { %v174_v24 = vpack.c.bf16 %v173_v23, %v172_v22 }
  0xe8   :  { %305 = vmatmul.mubr.msk.bf16.vlgmr.msra.gmra.mrb[4].mxu0 %vm57_vm1, %v174_v24 }
 0x1bb   :  { %v235_v26 = vpop.f32.mrb[4].mxu0 }
 0x1bc   :  { %v236_v27 = vadd.f32 %v271_v25, %v235_v26  ;;  %v306_v28 = vpop.f32.mrb[5].mxu0 }
 0x1bd   :  { %v238_v29 = vpop.f32.mrb[6].mxu0 }
 0x1be   :  { %v242_v30 = vmax.f32 %v236_v27, 0.0  ;;  %v239_v31 = vadd.f32 %v271_v25, %v238_v29  ;;  %v307_v32 = vpop.f32.mrb[7].mxu0 }
 0x1c0   :  { %244 = vst.msk [vmem:[#allocation2] sm:$0xff] %vm57_vm1, %v242_v30  ;;  %v243_v33 = vmax.f32 %v239_v31, 0.0 }
 0x1c2   :  { %245 = vst.msk [vmem:[#allocation2 + $0x8] sm:$0xff] %vm57_vm1, %v243_v33 }
 0x1c3   :  { %332 = shalt.err (!%p329_p4)
}
 0x1c4   :  { %s333_s19 = scalar_lea.hbm %s447_s7, 256 }
 0x1c5   :  { %p334_p5 = scmp.ne.s32.totalorder %s447_s7, %s333_s19  ;;  %p337_p6 = scmp.lt.u32.totalorder %s333_s19, %s447_s7 }
 0x1c7   :  { %p339_p7 = pnand %p337_p6, %p334_p5 }
 0x1c9   :  { %342 = shalt.err (!%p339_p7)
}
 0x1ca   :  { %s348_s24 = smov 128   ;;  %s349_s25 = smov 8  }
 0x1cb   :  { %257 = dma.vmem_to_hbm [thread:$0]  %s252_s16, 256, %s447_s7, [#allocation3], %s348_s24, %s348_s24, %s349_s25  }
 0x1cc   :  { %343 = dma.done.wait [#allocation3], 256  }
 0x1cd   :  { %344 = vsyncadd [#allocation3], 4294967040 }
 0x1ce   :  { %261 = vsyncpa [#allocation3], 1 }

</bundles_post_ra>
